<compile_context>
chip_gen: v5e
topology: v5e:2x2
jax: 0.10.0
libtpu: 0.0.40
codegen_flags: <defaults>
</compile_context>

<pallas_src>
import functools

import numpy as np
import jax
import jax.numpy as jnp
from jax import lax
from jax.experimental import pallas as pl
from jax.experimental.pallas import tpu as pltpu

EPS = 1e-5  # nn.BatchNorm2d default eps


# ---------------------------------------------------------------------------
# Kernel
# ---------------------------------------------------------------------------
def _upsample_conv_bn_relu_kernel(x_ref, q_ref, p_ref, bias_ref, g_ref, gt_ref,
                                  gamma_ref, beta_ref, y_ref, *, inv_count):
    x = x_ref[...]                                                   # (H, N*C*W)

    # --- fused bilinear upsample + 3x3 conv: 3 small + 3 wide MXU matmuls ---
    r = jnp.dot(q_ref[0], x, preferred_element_type=jnp.float32)    # (H2, N*C*W)
    acc = jnp.dot(r, p_ref[0], preferred_element_type=jnp.float32)  # (H2, N*C*W2)
    for kh in (1, 2):
        r = jnp.dot(q_ref[kh], x, preferred_element_type=jnp.float32)
        acc = acc + jnp.dot(r, p_ref[kh], preferred_element_type=jnp.float32)
    conv = acc + bias_ref[...]                                       # (H2, N*C*W2)

    # --- BatchNorm2d batch statistics (single pass, lane-group reduce on MXU) ---
    g = g_ref[...]                                                   # (N*C*W2, CP)
    ch_sum = jnp.sum(jnp.dot(conv, g, preferred_element_type=jnp.float32),
                     axis=0, keepdims=True)                          # (1, CP)
    ch_sq = jnp.sum(jnp.dot(conv * conv, g, preferred_element_type=jnp.float32),
                    axis=0, keepdims=True)                           # (1, CP)
    mean = ch_sum * inv_count
    var = ch_sq * inv_count - mean * mean                            # biased variance
    scale = gamma_ref[...] * lax.rsqrt(var + EPS)                    # (1, CP)
    shift = beta_ref[...] - mean * scale                             # (1, CP)

    # broadcast per-channel scale/shift back to the lane layout with one matmul
    lanes = jnp.dot(jnp.concatenate([scale, shift], axis=0), gt_ref[...],
                    preferred_element_type=jnp.float32)              # (2, N*C*W2)

    # --- affine + ReLU, lane-dense store ---
    y_ref[...] = jnp.maximum(conv * lanes[0:1, :] + lanes[1:2, :], 0.0)


# ---------------------------------------------------------------------------
# Shape-only constant tables (numpy, cached)
# ---------------------------------------------------------------------------
def _bilinear_matrix_np(n_in, n_out):
    """Interpolation matrix A (n_out, n_in), bilinear resize, align_corners=True."""
    out_idx = np.arange(n_out, dtype=np.float64)
    src = out_idx * (n_in - 1) / (n_out - 1)
    i0 = np.clip(np.floor(src), 0, n_in - 1).astype(np.int64)
    i1 = np.minimum(i0 + 1, n_in - 1)
    w1 = (src - i0).astype(np.float32)
    w0 = 1.0 - w1
    A = np.zeros((n_out, n_in), np.float32)
    A[np.arange(n_out), i0] += w0
    A[np.arange(n_out), i1] += w1
    return A


def _row_shift(A, d):
    """out[r, :] = A[r + d, :] if 0 <= r + d < rows else 0."""
    rows = A.shape[0]
    out = np.zeros_like(A)
    if d == 0:
        out[:] = A
    elif d > 0:
        out[:rows - d] = A[d:]
    else:
        out[-d:] = A[:rows + d]
    return out


def _col_shift(A, d):
    """out[:, c] = A[:, c + d] if 0 <= c + d < cols else 0."""
    cols = A.shape[1]
    out = np.zeros_like(A)
    if d == 0:
        out[:] = A
    elif d > 0:
        out[:, :cols - d] = A[:, d:]
    else:
        out[:, -d:] = A[:, :cols + d]
    return out


@functools.lru_cache(maxsize=None)
def _static_tables(N, C, H, W):
    H2, W2 = 2 * H, 2 * W
    A_h = _bilinear_matrix_np(H, H2)            # (H2, H)
    A_wT = _bilinear_matrix_np(W, W2).T         # (W, W2)
    # Row-interp matrices with the conv's kh shift folded in.
    Q = np.stack([_row_shift(A_h, kh - 1) for kh in range(3)])           # (3, H2, H)
    # Column-interp matrices with the conv's kw shift folded in.
    AwT_s = np.stack([_col_shift(A_wT, kw - 1) for kw in range(3)])      # (3, W, W2)
    # Channel-selector matrices for the BN lane-group reduction / broadcast.
    c_pad = max(128, ((C + 127) // 128) * 128)
    chan_of_lane = np.tile(np.repeat(np.arange(C), W2), N)               # (N*C*W2,)
    G = np.zeros((N * C * W2, c_pad), np.float32)
    G[np.arange(N * C * W2), chan_of_lane] = 1.0
    GT = np.ascontiguousarray(G.T)                                       # (c_pad, N*C*W2)
    return Q, AwT_s, G, GT, c_pad


# ---------------------------------------------------------------------------
# Wrapper
# ---------------------------------------------------------------------------
@jax.jit
def upsample_forward(x, w, b, gamma, beta):
    N, C, H, W = x.shape
    H2, W2 = 2 * H, 2 * W
    Q_np, AwT_np, G_np, GT_np, c_pad = _static_tables(N, C, H, W)

    Q = jnp.asarray(Q_np)                                            # (3, H2, H)
    G = jnp.asarray(G_np)                                            # (N*C*W2, c_pad)
    GT = jnp.asarray(GT_np)                                          # (c_pad, N*C*W2)

    # P_kh = I_N (x) sum_kw ( W[:,:,kh,kw]^T (x) A_wT_kw )  -> (N*C*W, N*C*W2)
    wf = w.astype(jnp.float32)
    eye_n = jnp.eye(N, dtype=jnp.float32)
    Ps = []
    for kh in range(3):
        K = jnp.zeros((C * W, C * W2), jnp.float32)
        for kw in range(3):
            K = K + jnp.kron(wf[:, :, kh, kw].T, jnp.asarray(AwT_np[kw]))
        Ps.append(jnp.kron(eye_n, K))
    P = jnp.stack(Ps)                                                # (3, N*C*W, N*C*W2)

    bias_lane = jnp.tile(jnp.repeat(b.astype(jnp.float32), W2), N)[None, :]  # (1, N*C*W2)
    gamma_pad = jnp.pad(gamma.astype(jnp.float32)[None, :], ((0, 0), (0, c_pad - C)))
    beta_pad = jnp.pad(beta.astype(jnp.float32)[None, :], ((0, 0), (0, c_pad - C)))

    # Lane-dense input slab: (H, N*C*W); lane index = n*C*W + c*W + w.
    X = x.astype(jnp.float32).transpose(2, 0, 1, 3).reshape(H, N * C * W)

    kernel = functools.partial(_upsample_conv_bn_relu_kernel,
                               inv_count=1.0 / float(N * H2 * W2))
    vmem = pl.BlockSpec(memory_space=pltpu.MemorySpace.VMEM)

    y_flat = pl.pallas_call(
        kernel,
        out_shape=jax.ShapeDtypeStruct((H2, N * C * W2), jnp.float32),
        in_specs=[vmem] * 8,
        out_specs=vmem,
        compiler_params=pltpu.CompilerParams(vmem_limit_bytes=32 * 1024 * 1024),
    )(X, Q, P, bias_lane, G, GT, gamma_pad, beta_pad)

    # (H2, N, C, W2) -> (N, C, H2, W2)   (layout plumbing outside the kernel)
    return y_flat.reshape(H2, N, C, W2).transpose(1, 2, 0, 3)


# ---------------------------------------------------------------------------
# Pure-JAX reference of the PyTorch module forward (training-mode BN)
# ---------------------------------------------------------------------------
def reference_forward(x, w, b, gamma, beta):
    N, C, H, W = x.shape
    H2, W2 = 2 * H, 2 * W
    A_h = jnp.asarray(_bilinear_matrix_np(H, H2))
    A_w = jnp.asarray(_bilinear_matrix_np(W, W2))
    up = jnp.einsum('ph,nchw->ncpw', A_h, x, precision=lax.Precision.HIGHEST)
    up = jnp.einsum('qw,ncpw->ncpq', A_w, up, precision=lax.Precision.HIGHEST)
    conv = lax.conv_general_dilated(up, w, (1, 1), ((1, 1), (1, 1)),
                                    dimension_numbers=('NCHW', 'OIHW', 'NCHW'),
                                    precision=lax.Precision.HIGHEST)
    conv = conv + b[None, :, None, None]
    mean = conv.mean(axis=(0, 2, 3), keepdims=True)
    var = conv.var(axis=(0, 2, 3), keepdims=True)
    y = (conv - mean) * lax.rsqrt(var + EPS) * gamma[None, :, None, None] \
        + beta[None, :, None, None]
    return jnp.maximum(y, 0.0)


if __name__ == "__main__":
    key = jax.random.PRNGKey(0)
    kx, kw, kb, kg, kbt = jax.random.split(key, 5)
    N, C, H, W = 2, 4, 16, 16

    x = jax.random.normal(kx, (N, C, H, W), jnp.float32)
    # Deterministic synthetic parameters (shapes from the module __init__).
    w = 0.1 * jax.random.normal(kw, (C, C, 3, 3), jnp.float32)    # Conv2d weight (OIHW)
    b = 0.1 * jax.random.normal(kb, (C,), jnp.float32)            # Conv2d bias
    gamma = 1.0 + 0.1 * jax.random.normal(kg, (C,), jnp.float32)  # BN weight
    beta = 0.1 * jax.random.normal(kbt, (C,), jnp.float32)        # BN bias

    y = jax.block_until_ready(upsample_forward(x, w, b, gamma, beta))
    y_ref = jax.block_until_ready(reference_forward(x, w, b, gamma, beta))

    assert y.shape == (N, C, 2 * H, 2 * W), y.shape
    max_err = float(jnp.max(jnp.abs(y - y_ref)))
    assert jnp.allclose(y, y_ref, atol=3e-3, rtol=3e-3), max_err
    print("KERNEL_OK")
</pallas_src>

<mosaic_0001>
module attributes {stable_mosaic.version = 11 : i64} {
  func.func @_upsample_conv_bn_relu_kernel(%arg0: memref<16x128xf32, #tpu.memory_space<vmem>>, %arg1: memref<3x32x16xf32, #tpu.memory_space<vmem>>, %arg2: memref<3x128x256xf32, #tpu.memory_space<vmem>>, %arg3: memref<1x256xf32, #tpu.memory_space<vmem>>, %arg4: memref<256x128xf32, #tpu.memory_space<vmem>>, %arg5: memref<128x256xf32, #tpu.memory_space<vmem>>, %arg6: memref<1x128xf32, #tpu.memory_space<vmem>>, %arg7: memref<1x128xf32, #tpu.memory_space<vmem>>, %arg8: memref<32x256xf32, #tpu.memory_space<vmem>>) attributes {dimension_semantics = [], scalar_prefetch = 0 : i64, scratch_operands = 0 : i64, tpu.core_type = #tpu.core_type<tc>} {
    %c0 = arith.constant 0 : index
    %c0_0 = arith.constant 0 : index
    %0 = vector.load %arg0[%c0, %c0_0] : memref<16x128xf32, #tpu.memory_space<vmem>>, vector<16x128xf32>
    %c0_1 = arith.constant 0 : index
    %c0_2 = arith.constant 0 : index
    %c0_3 = arith.constant 0 : index
    %1 = vector.load %arg1[%c0_1, %c0_2, %c0_3] : memref<3x32x16xf32, #tpu.memory_space<vmem>>, vector<1x32x16xf32>
    %2 = vector.shape_cast %1 : vector<1x32x16xf32> to vector<32x16xf32>
    %cst = arith.constant dense<0.000000e+00> : vector<32x128xf32>
    %3 = tpu.matmul %2, %0, %cst {dimension_numbers = #tpu.dot_dimension_numbers<[1], [0], [0], [1], [0, 0, 1, 1], [], []>} : vector<32x16xf32>, vector<16x128xf32>, vector<32x128xf32> -> vector<32x128xf32>
    %c0_4 = arith.constant 0 : index
    %c0_5 = arith.constant 0 : index
    %c0_6 = arith.constant 0 : index
    %4 = vector.load %arg2[%c0_4, %c0_5, %c0_6] : memref<3x128x256xf32, #tpu.memory_space<vmem>>, vector<1x128x256xf32>
    %5 = vector.shape_cast %4 : vector<1x128x256xf32> to vector<128x256xf32>
    %cst_7 = arith.constant dense<0.000000e+00> : vector<32x256xf32>
    %6 = tpu.matmul %3, %5, %cst_7 {dimension_numbers = #tpu.dot_dimension_numbers<[1], [0], [0], [1], [0, 0, 1, 1], [], []>} : vector<32x128xf32>, vector<128x256xf32>, vector<32x256xf32> -> vector<32x256xf32>
    %c1 = arith.constant 1 : index
    %c0_8 = arith.constant 0 : index
    %c0_9 = arith.constant 0 : index
    %7 = vector.load %arg1[%c1, %c0_8, %c0_9] : memref<3x32x16xf32, #tpu.memory_space<vmem>>, vector<1x32x16xf32>
    %8 = vector.shape_cast %7 : vector<1x32x16xf32> to vector<32x16xf32>
    %cst_10 = arith.constant dense<0.000000e+00> : vector<32x128xf32>
    %9 = tpu.matmul %8, %0, %cst_10 {dimension_numbers = #tpu.dot_dimension_numbers<[1], [0], [0], [1], [0, 0, 1, 1], [], []>} : vector<32x16xf32>, vector<16x128xf32>, vector<32x128xf32> -> vector<32x128xf32>
    %c1_11 = arith.constant 1 : index
    %c0_12 = arith.constant 0 : index
    %c0_13 = arith.constant 0 : index
    %10 = vector.load %arg2[%c1_11, %c0_12, %c0_13] : memref<3x128x256xf32, #tpu.memory_space<vmem>>, vector<1x128x256xf32>
    %11 = vector.shape_cast %10 : vector<1x128x256xf32> to vector<128x256xf32>
    %cst_14 = arith.constant dense<0.000000e+00> : vector<32x256xf32>
    %12 = tpu.matmul %9, %11, %cst_14 {dimension_numbers = #tpu.dot_dimension_numbers<[1], [0], [0], [1], [0, 0, 1, 1], [], []>} : vector<32x128xf32>, vector<128x256xf32>, vector<32x256xf32> -> vector<32x256xf32>
    %13 = arith.addf %6, %12 : vector<32x256xf32>
    %c2 = arith.constant 2 : index
    %c0_15 = arith.constant 0 : index
    %c0_16 = arith.constant 0 : index
    %14 = vector.load %arg1[%c2, %c0_15, %c0_16] : memref<3x32x16xf32, #tpu.memory_space<vmem>>, vector<1x32x16xf32>
    %15 = vector.shape_cast %14 : vector<1x32x16xf32> to vector<32x16xf32>
    %cst_17 = arith.constant dense<0.000000e+00> : vector<32x128xf32>
    %16 = tpu.matmul %15, %0, %cst_17 {dimension_numbers = #tpu.dot_dimension_numbers<[1], [0], [0], [1], [0, 0, 1, 1], [], []>} : vector<32x16xf32>, vector<16x128xf32>, vector<32x128xf32> -> vector<32x128xf32>
    %c2_18 = arith.constant 2 : index
    %c0_19 = arith.constant 0 : index
    %c0_20 = arith.constant 0 : index
    %17 = vector.load %arg2[%c2_18, %c0_19, %c0_20] : memref<3x128x256xf32, #tpu.memory_space<vmem>>, vector<1x128x256xf32>
    %18 = vector.shape_cast %17 : vector<1x128x256xf32> to vector<128x256xf32>
    %cst_21 = arith.constant dense<0.000000e+00> : vector<32x256xf32>
    %19 = tpu.matmul %16, %18, %cst_21 {dimension_numbers = #tpu.dot_dimension_numbers<[1], [0], [0], [1], [0, 0, 1, 1], [], []>} : vector<32x128xf32>, vector<128x256xf32>, vector<32x256xf32> -> vector<32x256xf32>
    %20 = arith.addf %13, %19 : vector<32x256xf32>
    %c0_22 = arith.constant 0 : index
    %c0_23 = arith.constant 0 : index
    %21 = vector.load %arg3[%c0_22, %c0_23] : memref<1x256xf32, #tpu.memory_space<vmem>>, vector<1x256xf32>
    %22 = vector.broadcast %21 : vector<1x256xf32> to vector<32x256xf32>
    %23 = arith.addf %20, %22 : vector<32x256xf32>
    %c0_24 = arith.constant 0 : index
    %c0_25 = arith.constant 0 : index
    %24 = vector.load %arg4[%c0_24, %c0_25] : memref<256x128xf32, #tpu.memory_space<vmem>>, vector<256x128xf32>
    %cst_26 = arith.constant dense<0.000000e+00> : vector<32x128xf32>
    %25 = tpu.matmul %23, %24, %cst_26 {dimension_numbers = #tpu.dot_dimension_numbers<[1], [0], [0], [1], [0, 0, 1, 1], [], []>} : vector<32x256xf32>, vector<256x128xf32>, vector<32x128xf32> -> vector<32x128xf32>
    %cst_27 = arith.constant dense<0.000000e+00> : vector<128xf32>
    %26 = vector.multi_reduction <add>, %25, %cst_27 [0] : vector<32x128xf32> to vector<128xf32>
    %27 = vector.shape_cast %26 : vector<128xf32> to vector<1x128xf32>
    %28 = arith.mulf %23, %23 : vector<32x256xf32>
    %cst_28 = arith.constant dense<0.000000e+00> : vector<32x128xf32>
    %29 = tpu.matmul %28, %24, %cst_28 {dimension_numbers = #tpu.dot_dimension_numbers<[1], [0], [0], [1], [0, 0, 1, 1], [], []>} : vector<32x256xf32>, vector<256x128xf32>, vector<32x128xf32> -> vector<32x128xf32>
    %cst_29 = arith.constant dense<0.000000e+00> : vector<128xf32>
    %30 = vector.multi_reduction <add>, %29, %cst_29 [0] : vector<32x128xf32> to vector<128xf32>
    %31 = vector.shape_cast %30 : vector<128xf32> to vector<1x128xf32>
    %cst_30 = arith.constant 4.8828125E-4 : f32
    %32 = vector.broadcast %cst_30 : f32 to vector<1x128xf32>
    %33 = arith.mulf %27, %32 : vector<1x128xf32>
    %cst_31 = arith.constant 4.8828125E-4 : f32
    %34 = vector.broadcast %cst_31 : f32 to vector<1x128xf32>
    %35 = arith.mulf %31, %34 : vector<1x128xf32>
    %36 = arith.mulf %33, %33 : vector<1x128xf32>
    %37 = arith.subf %35, %36 : vector<1x128xf32>
    %c0_32 = arith.constant 0 : index
    %c0_33 = arith.constant 0 : index
    %38 = vector.load %arg6[%c0_32, %c0_33] : memref<1x128xf32, #tpu.memory_space<vmem>>, vector<1x128xf32>
    %cst_34 = arith.constant 9.99999974E-6 : f32
    %39 = vector.broadcast %cst_34 : f32 to vector<1x128xf32>
    %40 = arith.addf %37, %39 : vector<1x128xf32>
    %41 = math.rsqrt %40 : vector<1x128xf32>
    %42 = arith.mulf %38, %41 : vector<1x128xf32>
    %c0_35 = arith.constant 0 : index
    %c0_36 = arith.constant 0 : index
    %43 = vector.load %arg7[%c0_35, %c0_36] : memref<1x128xf32, #tpu.memory_space<vmem>>, vector<1x128xf32>
    %44 = arith.mulf %33, %42 : vector<1x128xf32>
    %45 = arith.subf %43, %44 : vector<1x128xf32>
    %46 = tpu.concatenate %42, %45 in 0 : vector<1x128xf32>, vector<1x128xf32> -> vector<2x128xf32>
    %c0_37 = arith.constant 0 : index
    %c0_38 = arith.constant 0 : index
    %47 = vector.load %arg5[%c0_37, %c0_38] : memref<128x256xf32, #tpu.memory_space<vmem>>, vector<128x256xf32>
    %cst_39 = arith.constant dense<0.000000e+00> : vector<2x256xf32>
    %48 = tpu.matmul %46, %47, %cst_39 {dimension_numbers = #tpu.dot_dimension_numbers<[1], [0], [0], [1], [0, 0, 1, 1], [], []>} : vector<2x128xf32>, vector<128x256xf32>, vector<2x256xf32> -> vector<2x256xf32>
    %49 = vector.extract_strided_slice %48 {offsets = [0, 0], sizes = [1, 256], strides = [1, 1]} : vector<2x256xf32> to vector<1x256xf32>
    %50 = vector.broadcast %49 : vector<1x256xf32> to vector<32x256xf32>
    %51 = arith.mulf %23, %50 : vector<32x256xf32>
    %52 = vector.extract_strided_slice %48 {offsets = [1, 0], sizes = [1, 256], strides = [1, 1]} : vector<2x256xf32> to vector<1x256xf32>
    %53 = vector.broadcast %52 : vector<1x256xf32> to vector<32x256xf32>
    %54 = arith.addf %51, %53 : vector<32x256xf32>
    %cst_40 = arith.constant 0.000000e+00 : f32
    %55 = vector.broadcast %cst_40 : f32 to vector<32x256xf32>
    %56 = arith.maximumf %54, %55 : vector<32x256xf32>
    %c0_41 = arith.constant 0 : index
    %c0_42 = arith.constant 0 : index
    %57 = vector.load %arg8[%c0_41, %c0_42] : memref<32x256xf32, #tpu.memory_space<vmem>>, vector<32x256xf32>
    tpu.vector_store %arg8[%c0_41, %c0_42], %56 {strides = array<i32>} : memref<32x256xf32, #tpu.memory_space<vmem>>, vector<32x256xf32>,
    return
  }
}

</mosaic_0001>

<bundles_post_ra>
// kernel: tile.5
= control target key start
LH: loop header
LB: loop body
LE: loop exit
PB: predicated region body
PF: predicated region fallthrough
CT: control target
= control target key end

     0   :  { %s37_s8 = smov 32   ;;  %s38_s9 = smov 64   ;;  %vm7_vm0 = vcmask 261120   ;;  %vm13_vm1 = vcmask 1048320   ;;  %vm19_vm2 = vcmask 785920   ;;  %vm25_vm3 = vcmask 523520   ;;  %s55_s0 = inlined_call_operand.vmem [shape: f32[4,32], index: 0, kind: input, shape index: {}]   ;;  %s56_s1 = inlined_call_operand.vmem [shape: f32[128], index: 1, kind: output, shape index: {}]  }
   0x1   :  { %v4_v0 = vld [vmem:[%s55_s0] sm:$0xf]  ;;  %s36_s0 = smov 96  }
   0x2   :  { %5 = vst [vmem:[#allocation1] sm:$0xf] %v4_v0 }
   0x9   :  { %v10_v1 = vld [vmem:[#allocation1 + $0x3] sm:$0x1]   ;;  %v22_v2 = vld [vmem:[#allocation1 + $0x1] sm:$0x1]   ;;  %v16_v3 = vld [vmem:[#allocation1 + $0x2] sm:$0x1]  }
   0xa   :  { %11 = vrot.lane.b32.xlu0 %v10_v1, %s36_s0  ;;  %23 = vrot.lane.b32.xlu1 %v22_v2, %s37_s8  ;;  %v6_v4 = vld [vmem:[#allocation1] sm:$0x1]  }
   0xb   :  { %8 = vst.msk [vmem:[#allocation0] sm:$0x1] %vm7_vm0, %v6_v4  }
  0x12   :  { %17 = vrot.lane.b32.xlu0 %v16_v3, %s38_s9 }
  0x7c   :  { %v12_v5 = vpop.permute.xlu0 %11   ;;  %v24_v6 = vpop.permute.xlu1 %23  }
  0x7d   :  { %14 = vst.msk [vmem:[#allocation0] sm:$0x1] %vm13_vm1, %v12_v5  }
  0x84   :  { %v18_v7 = vpop.permute.xlu0 %17  }
  0x85   :  { %20 = vst.msk [vmem:[#allocation0] sm:$0x1] %vm19_vm2, %v18_v7  }
  0x86   :  { %26 = vst.msk [vmem:[#allocation0] sm:$0x1] %vm25_vm3, %v24_v6  }
  0x8d   :  { %v29_v8 = vld [vmem:[#allocation0] sm:$0x1] }
  0x8e   :  { %32 = vst [vmem:[%s56_s1] sm:$0x1] %v29_v8 }

// kernel: tile.6
= control target key start
LH: loop header
LB: loop body
LE: loop exit
PB: predicated region body
PF: predicated region fallthrough
CT: control target
= control target key end

     0   :  { %s22_s0 = inlined_call_operand.vmem [shape: f32[128], index: 0, kind: input, shape index: {}]   ;;  %s23_s1 = inlined_call_operand.vmem [shape: f32[2,128], index: 1, kind: output, shape index: {}]  }
   0x1   :  { %v4_v0 = vld [vmem:[%s22_s0] ss:$0 sm:$0xff] }
   0x2   :  { %5 = vst [vmem:[%s23_s1] sm:$0x3] %v4_v0 }

// kernel: upsample_forward.1
= control target key start
LH: loop header
LB: loop body
LE: loop exit
PB: predicated region body
PF: predicated region fallthrough
CT: control target
= control target key end

     0   :  { %vm35_vm0 = vcmask 130048   ;;  %vm660_vm4 = vcmask 1040384   ;;  %s1542_s0 = inlined_call_operand.vmem [shape: f32[16,128], index: 0, kind: input, shape index: {}]   ;;  %s1543_s1 = inlined_call_operand.vmem [shape: f32[3,32,16], index: 1, kind: input, shape index: {}]   ;;  %s1544_s2 = inlined_call_operand.vmem [shape: f32[3,128,256], index: 2, kind: input, shape index: {}]   ;;  %s1545_s4 = inlined_call_operand.vmem [shape: f32[256,128], index: 4, kind: input, shape index: {}]   ;;  %s1546_s3 = inlined_call_operand.vmem [shape: f32[1,256], index: 3, kind: input, shape index: {}]   ;;  %s1547_s5 = inlined_call_operand.vmem [shape: f32[128,256], index: 5, kind: input, shape index: {}]   ;;  %s1548_s6 = inlined_call_operand.vmem [shape: f32[1,128], index: 6, kind: input, shape index: {}]   ;;  %s1549_s7 = inlined_call_operand.vmem [shape: f32[1,128], index: 7, kind: input, shape index: {}]   ;;  %s1550_s8 = inlined_call_operand.vmem [shape: f32[32,256], index: 8, kind: output, shape index: {}]  }
   0x1   :  { %v908_v0 = vld [vmem:[%s1542_s0 + $0x8] sm:$0xff]  ;;  %v913_v1 = vld [vmem:[%s1542_s0] sm:$0xff]  ;;  %v816_v4 = vld [vmem:[%s1544_s2 + $0x1f0] sm:$0xff] }
   0x2   :  { %140 = vmatpush.msra.mxu1 %v908_v0  ;;  %v778_v2 = vld [vmem:[%s1543_s1 + $0x20] sm:$0xff]  ;;  %62 = vmatpush.msra.mxu0 %v908_v0  ;;  %v817_v5 = vld [vmem:[%s1544_s2 + $0x1f8] sm:$0xff]  ;;  %v815_v7 = vld [vmem:[%s1544_s2 + $0x1e8] sm:$0xff] }
   0x3   :  { %v31_v3 = vld [vmem:[%s1543_s1] sm:$0xff]  ;;  %188 = vmatpush.msra.mxu2 %v816_v4  ;;  %217 = vmatpush.msra.mxu3 %v817_v5  ;;  %v812_v8 = vld [vmem:[%s1544_s2 + $0x1d0] sm:$0xff]  ;;  %v813_v9 = vld [vmem:[%s1544_s2 + $0x1d8] sm:$0xff] }
   0x4   :  { %141 = vmatpush.msra.mxu1 %v913_v1  ;;  %63 = vmatpush.msra.mxu0 %v913_v1  ;;  %v814_v6 = vld [vmem:[%s1544_s2 + $0x1e0] sm:$0xff]  ;;  %v107_v10 = vld [vmem:[%s1544_s2 + $0xf0] sm:$0xff]  ;;  %v108_v11 = vld [vmem:[%s1544_s2 + $0xf8] sm:$0xff] }
   0x5   :  { %782 = vmatmul.msk.f32.vlgmr.msra.gmra.mxu1 %vm35_vm0, %v778_v2  ;;  %774 = vmatmul.msk.f32.vlgmr.msra.gmra.mxu0 %vm35_vm0, %v31_v3  ;;  %v105_v12 = vld [vmem:[%s1544_s2 + $0xe0] sm:$0xff]  ;;  %v106_v13 = vld [vmem:[%s1544_s2 + $0xe8] sm:$0xff]  ;;  %v808_v18 = vld [vmem:[%s1544_s2 + $0x1b0] sm:$0xff] }
   0x6   :  { %189 = vmatpush.msra.mxu2 %v814_v6  ;;  %218 = vmatpush.msra.mxu3 %v815_v7  ;;  %v810_v14 = vld [vmem:[%s1544_s2 + $0x1c0] sm:$0xff]  ;;  %v811_v15 = vld [vmem:[%s1544_s2 + $0x1c8] sm:$0xff]  ;;  %v809_v19 = vld [vmem:[%s1544_s2 + $0x1b8] sm:$0xff] }
   0x7   :  { %246 = vmatpush.msrb.mxu0 %v107_v10  ;;  %275 = vmatpush.msrb.mxu1 %v108_v11  ;;  %v779_v16 = vld [vmem:[%s1543_s1 + $0x28] sm:$0xff]  ;;  %v103_v20 = vld [vmem:[%s1544_s2 + $0xd0] sm:$0xff]  ;;  %v104_v21 = vld [vmem:[%s1544_s2 + $0xd8] sm:$0xff] }
   0x8   :  { %v32_v17 = vld [vmem:[%s1543_s1 + $0x8] sm:$0xff]  ;;  %190 = vmatpush.msra.mxu2 %v812_v8  ;;  %219 = vmatpush.msra.mxu3 %v813_v9  ;;  %v806_v22 = vld [vmem:[%s1544_s2 + $0x1a0] sm:$0xff]  ;;  %v804_v26 = vld [vmem:[%s1544_s2 + $0x190] sm:$0xff] }
   0x9   :  { %247 = vmatpush.msrb.mxu0 %v105_v12  ;;  %276 = vmatpush.msrb.mxu1 %v106_v13  ;;  %v807_v23 = vld [vmem:[%s1544_s2 + $0x1a8] sm:$0xff]  ;;  %v101_v24 = vld [vmem:[%s1544_s2 + $0xc0] sm:$0xff]  ;;  %v805_v27 = vld [vmem:[%s1544_s2 + $0x198] sm:$0xff] }
   0xa   :  { %191 = vmatpush.msra.mxu2 %v810_v14  ;;  %220 = vmatpush.msra.mxu3 %v811_v15  ;;  %v102_v25 = vld [vmem:[%s1544_s2 + $0xc8] sm:$0xff]  ;;  %v99_v28 = vld [vmem:[%s1544_s2 + $0xb0] sm:$0xff]  ;;  %v100_v29 = vld [vmem:[%s1544_s2 + $0xb8] sm:$0xff] }
   0xb   :  { %248 = vmatpush.msrb.mxu0 %v103_v20  ;;  %277 = vmatpush.msrb.mxu1 %v104_v21  ;;  %v802_v30 = vld [vmem:[%s1544_s2 + $0x180] sm:$0xff]  ;;  %v803_v31 = vld [vmem:[%s1544_s2 + $0x188] sm:$0xff]  ;;  %v780_v32 = vld [vmem:[%s1543_s1 + $0x30] sm:$0xff] }
   0xc   :  { %192 = vmatpush.msra.mxu2 %v808_v18  ;;  %221 = vmatpush.msra.mxu3 %v809_v19  ;;  %v33_v33 = vld [vmem:[%s1543_s1 + $0x10] sm:$0xff]  ;;  %v801_v35 = vld [vmem:[%s1544_s2 + $0x178] sm:$0xff]  ;;  %v97_v36 = vld [vmem:[%s1544_s2 + $0xa0] sm:$0xff] }
   0xd   :  { %783 = vmatmul.msk.f32.gmra.mxu1 %vm35_vm0, %v779_v16  ;;  %775 = vmatmul.msk.f32.gmra.mxu0 %vm35_vm0, %v32_v17  ;;  %v800_v34 = vld [vmem:[%s1544_s2 + $0x170] sm:$0xff]  ;;  %v98_v37 = vld [vmem:[%s1544_s2 + $0xa8] sm:$0xff]  ;;  %v798_v38 = vld [vmem:[%s1544_s2 + $0x160] sm:$0xff] }
   0xe   :  { %193 = vmatpush.msra.mxu2 %v806_v22  ;;  %222 = vmatpush.msra.mxu3 %v807_v23  ;;  %v799_v39 = vld [vmem:[%s1544_s2 + $0x168] sm:$0xff]  ;;  %v95_v40 = vld [vmem:[%s1544_s2 + $0x90] sm:$0xff]  ;;  %v96_v41 = vld [vmem:[%s1544_s2 + $0x98] sm:$0xff] }
   0xf   :  { %249 = vmatpush.msrb.mxu0 %v101_v24  ;;  %278 = vmatpush.msrb.mxu1 %v102_v25  ;;  %v796_v42 = vld [vmem:[%s1544_s2 + $0x150] sm:$0xff]  ;;  %v797_v43 = vld [vmem:[%s1544_s2 + $0x158] sm:$0xff]  ;;  %v93_v44 = vld [vmem:[%s1544_s2 + $0x80] sm:$0xff] }
  0x10   :  { %194 = vmatpush.msra.mxu2 %v804_v26  ;;  %223 = vmatpush.msra.mxu3 %v805_v27  ;;  %v94_v45 = vld [vmem:[%s1544_s2 + $0x88] sm:$0xff]  ;;  %v794_v46 = vld [vmem:[%s1544_s2 + $0x140] sm:$0xff]  ;;  %v781_v48 = vld [vmem:[%s1543_s1 + $0x38] sm:$0xff] }
  0x11   :  { %250 = vmatpush.msrb.mxu0 %v99_v28  ;;  %279 = vmatpush.msrb.mxu1 %v100_v29  ;;  %v795_v47 = vld [vmem:[%s1544_s2 + $0x148] sm:$0xff]  ;;  %v34_v49 = vld [vmem:[%s1543_s1 + $0x18] sm:$0xff]  ;;  %v91_v50 = vld [vmem:[%s1544_s2 + $0x70] sm:$0xff] }
  0x12   :  { %195 = vmatpush.msra.mxu2 %v802_v30  ;;  %224 = vmatpush.msra.mxu3 %v803_v31  ;;  %v92_v51 = vld [vmem:[%s1544_s2 + $0x78] sm:$0xff]  ;;  %v792_v52 = vld [vmem:[%s1544_s2 + $0x130] sm:$0xff]  ;;  %v89_v54 = vld [vmem:[%s1544_s2 + $0x60] sm:$0xff] }
  0x13   :  { %251 = vmatpush.msrb.mxu0 %v97_v36  ;;  %280 = vmatpush.msrb.mxu1 %v98_v37  ;;  %v793_v53 = vld [vmem:[%s1544_s2 + $0x138] sm:$0xff]  ;;  %v90_v55 = vld [vmem:[%s1544_s2 + $0x68] sm:$0xff]  ;;  %v790_v56 = vld [vmem:[%s1544_s2 + $0x120] sm:$0xff] }
  0x14   :  { %196 = vmatpush.msra.mxu2 %v800_v34  ;;  %225 = vmatpush.msra.mxu3 %v801_v35  ;;  %v791_v57 = vld [vmem:[%s1544_s2 + $0x128] sm:$0xff]  ;;  %v87_v58 = vld [vmem:[%s1544_s2 + $0x50] sm:$0xff]  ;;  %v88_v59 = vld [vmem:[%s1544_s2 + $0x58] sm:$0xff] }
  0x15   :  { %784 = vmatmul.msk.f32.gmra.mxu1 %vm35_vm0, %v780_v32  ;;  %776 = vmatmul.msk.f32.gmra.mxu0 %vm35_vm0, %v33_v33  ;;  %v788_v60 = vld [vmem:[%s1544_s2 + $0x110] sm:$0xff]  ;;  %v789_v61 = vld [vmem:[%s1544_s2 + $0x118] sm:$0xff]  ;;  %v85_v62 = vld [vmem:[%s1544_s2 + $0x40] sm:$0xff] }
  0x16   :  { %197 = vmatpush.msra.mxu2 %v798_v38  ;;  %226 = vmatpush.msra.mxu3 %v799_v39  ;;  %v86_v63 = vld [vmem:[%s1544_s2 + $0x48] sm:$0xff]  ;;  %v786_v2 = vld [vmem:[%s1544_s2 + $0x100] sm:$0xff]  ;;  %v83_v4 = vld [vmem:[%s1544_s2 + $0x30] sm:$0xff] }
  0x17   :  { %252 = vmatpush.msrb.mxu0 %v95_v40  ;;  %281 = vmatpush.msrb.mxu1 %v96_v41  ;;  %v787_v3 = vld [vmem:[%s1544_s2 + $0x108] sm:$0xff]  ;;  %v84_v5 = vld [vmem:[%s1544_s2 + $0x38] sm:$0xff]  ;;  %v81_v6 = vld [vmem:[%s1544_s2 + $0x20] sm:$0xff] }
  0x18   :  { %198 = vmatpush.msra.mxu2 %v796_v42  ;;  %227 = vmatpush.msra.mxu3 %v797_v43  ;;  %v82_v7 = vld [vmem:[%s1544_s2 + $0x28] sm:$0xff]  ;;  %v79_v8 = vld [vmem:[%s1544_s2 + $0x10] sm:$0xff]  ;;  %v80_v9 = vld [vmem:[%s1544_s2 + $0x18] sm:$0xff] }
  0x19   :  { %253 = vmatpush.msrb.mxu0 %v93_v44  ;;  %282 = vmatpush.msrb.mxu1 %v94_v45  ;;  %v77_v10 = vld [vmem:[%s1544_s2] sm:$0xff]  ;;  %v78_v11 = vld [vmem:[%s1544_s2 + $0x8] sm:$0xff]  ;;  %v820_v20 = vld [vmem:[%s1543_s1 + $0x50] sm:$0xff] }
  0x1a   :  { %199 = vmatpush.msra.mxu2 %v794_v46  ;;  %228 = vmatpush.msra.mxu3 %v795_v47  ;;  %v818_v18 = vld [vmem:[%s1543_s1 + $0x40] sm:$0xff]  ;;  %v819_v19 = vld [vmem:[%s1543_s1 + $0x48] sm:$0xff]  ;;  %v821_v21 = vld [vmem:[%s1543_s1 + $0x58] sm:$0xff] }
  0x1b   :  { %254 = vmatpush.msrb.mxu0 %v91_v50  ;;  %283 = vmatpush.msrb.mxu1 %v92_v51  ;;  %v856_v22 = vld [vmem:[%s1544_s2 + $0x2f0] sm:$0xff]  ;;  %v857_v23 = vld [vmem:[%s1544_s2 + $0x2f8] sm:$0xff]  ;;  %v854_v24 = vld [vmem:[%s1544_s2 + $0x2e0] sm:$0xff] }
  0x1c   :  { %200 = vmatpush.msra.mxu2 %v792_v52  ;;  %229 = vmatpush.msra.mxu3 %v793_v53  ;;  %v855_v25 = vld [vmem:[%s1544_s2 + $0x2e8] sm:$0xff]  ;;  %v852_v26 = vld [vmem:[%s1544_s2 + $0x2d0] sm:$0xff]  ;;  %v853_v27 = vld [vmem:[%s1544_s2 + $0x2d8] sm:$0xff] }
  0x1d   :  { %785 = vmatmul.msk.f32.gmra.mxu1 %vm35_vm0, %v781_v48  ;;  %777 = vmatmul.msk.f32.gmra.mxu0 %vm35_vm0, %v34_v49  ;;  %v850_v28 = vld [vmem:[%s1544_s2 + $0x2c0] sm:$0xff]  ;;  %v851_v29 = vld [vmem:[%s1544_s2 + $0x2c8] sm:$0xff]  ;;  %v848_v30 = vld [vmem:[%s1544_s2 + $0x2b0] sm:$0xff] }
  0x1e   :  { %255 = vmatpush.msrb.mxu0 %v89_v54  ;;  %284 = vmatpush.msrb.mxu1 %v90_v55  ;;  %v849_v31 = vld [vmem:[%s1544_s2 + $0x2b8] sm:$0xff]  ;;  %v846_v32 = vld [vmem:[%s1544_s2 + $0x2a0] sm:$0xff]  ;;  %v847_v33 = vld [vmem:[%s1544_s2 + $0x2a8] sm:$0xff] }
  0x1f   :  { %201 = vmatpush.msra.mxu2 %v790_v56  ;;  %230 = vmatpush.msra.mxu3 %v791_v57  ;;  %v844_v34 = vld [vmem:[%s1544_s2 + $0x290] sm:$0xff]  ;;  %v845_v35 = vld [vmem:[%s1544_s2 + $0x298] sm:$0xff]  ;;  %v842_v36 = vld [vmem:[%s1544_s2 + $0x280] sm:$0xff] }
  0x20   :  { %256 = vmatpush.msrb.mxu0 %v87_v58  ;;  %285 = vmatpush.msrb.mxu1 %v88_v59  ;;  %v843_v37 = vld [vmem:[%s1544_s2 + $0x288] sm:$0xff]  ;;  %v840_v38 = vld [vmem:[%s1544_s2 + $0x270] sm:$0xff]  ;;  %v841_v39 = vld [vmem:[%s1544_s2 + $0x278] sm:$0xff] }
  0x21   :  { %202 = vmatpush.msra.mxu2 %v788_v60  ;;  %231 = vmatpush.msra.mxu3 %v789_v61  ;;  %v838_v40 = vld [vmem:[%s1544_s2 + $0x260] sm:$0xff]  ;;  %v839_v41 = vld [vmem:[%s1544_s2 + $0x268] sm:$0xff]  ;;  %v836_v42 = vld [vmem:[%s1544_s2 + $0x250] sm:$0xff] }
  0x22   :  { %257 = vmatpush.msrb.mxu0 %v85_v62  ;;  %286 = vmatpush.msrb.mxu1 %v86_v63  ;;  %v837_v43 = vld [vmem:[%s1544_s2 + $0x258] sm:$0xff]  ;;  %v834_v44 = vld [vmem:[%s1544_s2 + $0x240] sm:$0xff]  ;;  %v835_v45 = vld [vmem:[%s1544_s2 + $0x248] sm:$0xff] }
  0x23   :  { %203 = vmatpush.msra.mxu2 %v786_v2  ;;  %232 = vmatpush.msra.mxu3 %v787_v3  ;;  %v832_v46 = vld [vmem:[%s1544_s2 + $0x230] sm:$0xff]  ;;  %v833_v47 = vld [vmem:[%s1544_s2 + $0x238] sm:$0xff]  ;;  %v830_v48 = vld [vmem:[%s1544_s2 + $0x220] sm:$0xff] }
  0x24   :  { %258 = vmatpush.msrb.mxu0 %v83_v4  ;;  %287 = vmatpush.msrb.mxu1 %v84_v5  ;;  %v831_v49 = vld [vmem:[%s1544_s2 + $0x228] sm:$0xff]  ;;  %v828_v50 = vld [vmem:[%s1544_s2 + $0x210] sm:$0xff]  ;;  %v829_v51 = vld [vmem:[%s1544_s2 + $0x218] sm:$0xff] }
  0x25   :  { %335 = vmatpush.msrb.mxu2 %v908_v0  ;;  %383 = vmatpush.msrb.mxu3 %v856_v22  ;;  %v826_v52 = vld [vmem:[%s1544_s2 + $0x200] sm:$0xff]  ;;  %v827_v53 = vld [vmem:[%s1544_s2 + $0x208] sm:$0xff]  ;;  %v494_v58 = vld [vmem:[%s1545_s4 + $0xf8] sm:$0xff] }
  0x26   :  { %259 = vmatpush.msrb.mxu0 %v81_v6  ;;  %288 = vmatpush.msrb.mxu1 %v82_v7  ;;  %v493_v59 = vld [vmem:[%s1545_s4 + $0xf0] sm:$0xff]  ;;  %v478_v60 = vld [vmem:[%s1545_s4 + $0x78] sm:$0xff]  ;;  %v492_v62 = vld [vmem:[%s1545_s4 + $0xe8] sm:$0xff] }
  0x27   :  { %336 = vmatpush.msrb.mxu2 %v913_v1  ;;  %384 = vmatpush.msrb.mxu3 %v854_v24  ;;  %v477_v61 = vld [vmem:[%s1545_s4 + $0x70] sm:$0xff]  ;;  %v476_v63 = vld [vmem:[%s1545_s4 + $0x68] sm:$0xff]  ;;  %v491_v2 = vld [vmem:[%s1545_s4 + $0xe0] sm:$0xff] }
  0x28   :  { %260 = vmatpush.msrb.mxu0 %v79_v8  ;;  %289 = vmatpush.msrb.mxu1 %v80_v9  ;;  %v490_v3 = vld [vmem:[%s1545_s4 + $0xd8] sm:$0xff]  ;;  %v475_v5 = vld [vmem:[%s1545_s4 + $0x60] sm:$0xff]  ;;  %v489_v6 = vld [vmem:[%s1545_s4 + $0xd0] sm:$0xff] }
  0x29   :  { %385 = vmatpush.msrb.mxu3 %v852_v26  ;;  %v474_v7 = vld [vmem:[%s1545_s4 + $0x58] sm:$0xff]  ;;  %v488_v8 = vld [vmem:[%s1545_s4 + $0xc8] sm:$0xff]  ;;  %v473_v9 = vld [vmem:[%s1545_s4 + $0x50] sm:$0xff] }
  0x2a   :  { %261 = vmatpush.msrb.mxu0 %v77_v10  ;;  %290 = vmatpush.msrb.mxu1 %v78_v11  ;;  %v487_v10 = vld [vmem:[%s1545_s4 + $0xc0] sm:$0xff]  ;;  %v486_v11 = vld [vmem:[%s1545_s4 + $0xb8] sm:$0xff]  ;;  %v468_v22 = vld [vmem:[%s1545_s4 + $0x28] sm:$0xff] }
  0x2b   :  { %386 = vmatpush.msrb.mxu3 %v850_v28  ;;  %v480_v26 = vld [vmem:[%s1545_s4 + $0x88] sm:$0xff]  ;;  %v479_v28 = vld [vmem:[%s1545_s4 + $0x80] sm:$0xff] }
  0x2c   :  { %412 = vmatpush.msra.mxu0 %v857_v23  ;;  %495 = vmatpush.msra.mxu1 %v478_v60  ;;  %v481_v23 = vld [vmem:[%s1545_s4 + $0x90] sm:$0xff] }
  0x2d   :  { %387 = vmatpush.msrb.mxu3 %v848_v30  ;;  %v465_v30 = vld [vmem:[%s1545_s4 + $0x10] sm:$0xff] }
  0x2e   :  { %413 = vmatpush.msra.mxu0 %v855_v25  ;;  %496 = vmatpush.msra.mxu1 %v477_v61  ;;  %v467_v25 = vld [vmem:[%s1545_s4 + $0x20] sm:$0xff] }
  0x2f   :  { %388 = vmatpush.msrb.mxu3 %v846_v32  ;;  %v463_v32 = vld [vmem:[%s1545_s4] sm:$0xff] }
  0x30   :  { %414 = vmatpush.msra.mxu0 %v853_v27  ;;  %497 = vmatpush.msra.mxu1 %v476_v63  ;;  %v466_v27 = vld [vmem:[%s1545_s4 + $0x18] sm:$0xff] }
  0x31   :  { %389 = vmatpush.msrb.mxu3 %v844_v34 }
  0x32   :  { %415 = vmatpush.msra.mxu0 %v851_v29  ;;  %498 = vmatpush.msra.mxu1 %v475_v5 }
  0x33   :  { %390 = vmatpush.msrb.mxu3 %v842_v36 }
  0x34   :  { %416 = vmatpush.msra.mxu0 %v849_v31  ;;  %499 = vmatpush.msra.mxu1 %v474_v7  ;;  %v464_v31 = vld [vmem:[%s1545_s4 + $0x8] sm:$0xff] }
  0x35   :  { %391 = vmatpush.msrb.mxu3 %v840_v38  ;;  %v449_v38 = vld [vmem:[%s1546_s3] sm:$0x3] }
  0x36   :  { %417 = vmatpush.msra.mxu0 %v847_v33  ;;  %500 = vmatpush.msra.mxu1 %v473_v9 }
  0x37   :  { %392 = vmatpush.msrb.mxu3 %v838_v40 }
  0x38   :  { %418 = vmatpush.msra.mxu0 %v845_v35 }
  0x39   :  { %393 = vmatpush.msrb.mxu3 %v836_v42 }
  0x3a   :  { %419 = vmatpush.msra.mxu0 %v843_v37 }
  0x3b   :  { %394 = vmatpush.msrb.mxu3 %v834_v44 }
  0x3c   :  { %420 = vmatpush.msra.mxu0 %v841_v39 }
  0x3d   :  { %395 = vmatpush.msrb.mxu3 %v832_v46 }
  0x3e   :  { %421 = vmatpush.msra.mxu0 %v839_v41  ;;  %v452_v41 = vperm.slane %v449_v38, 1 }
  0x3f   :  { %396 = vmatpush.msrb.mxu3 %v830_v48  ;;  %v451_v48 = vperm.slane %v449_v38, 0 }
  0x40   :  { %422 = vmatpush.msra.mxu0 %v837_v43 }
  0x41   :  { %397 = vmatpush.msrb.mxu3 %v828_v50 }
  0x42   :  { %423 = vmatpush.msra.mxu0 %v835_v45 }
  0x43   :  { %398 = vmatpush.msrb.mxu3 %v826_v52 }
  0x44   :  { %424 = vmatpush.msra.mxu0 %v833_v47 }
  0x46   :  { %425 = vmatpush.msra.mxu0 %v831_v49 }
  0x48   :  { %426 = vmatpush.msra.mxu0 %v829_v51 }
  0x4a   :  { %427 = vmatpush.msra.mxu0 %v827_v53 }
  0x82   :  { %v143_v0 = vpop.f32.mrf.mxu1  ;;  %v65_v12 = vpop.f32.mrf.mxu0 }
  0x83   :  { %204 = vmatmul.f32.vlgmr.msra.gmra.mxu2 %v143_v0  ;;  %233 = vmatmul.f32.vlgmr.msra.gmra.mxu3 %v143_v0  ;;  %v472_v0 = vld [vmem:[%s1545_s4 + $0x48] sm:$0xff] }
  0x84   :  { %262 = vmatmul.f32.vlgmr.msrb.gmra.mxu0 %v65_v12  ;;  %291 = vmatmul.f32.vlgmr.msrb.gmra.mxu1 %v65_v12 }
  0x85   :  { %524 = vmatpush.msra.mxu2 %v494_v58  ;;  %599 = vmatpush.msrb.mxu0 %v494_v58 }
  0x86   :  { %570 = vmatpush.msra.mxu3 %v478_v60  ;;  %501 = vmatpush.msra.mxu1 %v472_v0 }
  0x87   :  { %525 = vmatpush.msra.mxu2 %v493_v59  ;;  %600 = vmatpush.msrb.mxu0 %v493_v59 }
  0x88   :  { %571 = vmatpush.msra.mxu3 %v477_v61 }
  0x89   :  { %526 = vmatpush.msra.mxu2 %v492_v62  ;;  %601 = vmatpush.msrb.mxu0 %v492_v62 }
  0x8a   :  { %v146_v13 = vpop.f32.mrf.mxu1  ;;  %v68_v14 = vpop.f32.mrf.mxu0  ;;  %572 = vmatpush.msra.mxu3 %v476_v63 }
  0x8b   :  { %207 = vmatmul.f32.gmra.mxu2 %v146_v13  ;;  %236 = vmatmul.f32.gmra.mxu3 %v146_v13  ;;  %v485_v13 = vld [vmem:[%s1545_s4 + $0xb0] sm:$0xff] }
  0x8c   :  { %265 = vmatmul.f32.gmra.mxu0 %v68_v14  ;;  %294 = vmatmul.f32.gmra.mxu1 %v68_v14  ;;  %v471_v14 = vld [vmem:[%s1545_s4 + $0x40] sm:$0xff] }
  0x8d   :  { %527 = vmatpush.msra.mxu2 %v491_v2  ;;  %602 = vmatpush.msrb.mxu0 %v491_v2 }
  0x8e   :  { %573 = vmatpush.msra.mxu3 %v475_v5  ;;  %502 = vmatpush.msra.mxu1 %v471_v14 }
  0x8f   :  { %528 = vmatpush.msra.mxu2 %v490_v3  ;;  %603 = vmatpush.msrb.mxu0 %v490_v3 }
  0x90   :  { %574 = vmatpush.msra.mxu3 %v474_v7 }
  0x91   :  { %529 = vmatpush.msra.mxu2 %v489_v6  ;;  %604 = vmatpush.msrb.mxu0 %v489_v6 }
  0x92   :  { %v149_v15 = vpop.f32.mrf.mxu1  ;;  %v71_v16 = vpop.f32.mrf.mxu0  ;;  %575 = vmatpush.msra.mxu3 %v473_v9 }
  0x93   :  { %210 = vmatmul.f32.gmra.mxu2 %v149_v15  ;;  %239 = vmatmul.f32.gmra.mxu3 %v149_v15  ;;  %v484_v15 = vld [vmem:[%s1545_s4 + $0xa8] sm:$0xff] }
  0x94   :  { %268 = vmatmul.f32.gmra.mxu0 %v71_v16  ;;  %297 = vmatmul.f32.gmra.mxu1 %v71_v16  ;;  %v470_v16 = vld [vmem:[%s1545_s4 + $0x38] sm:$0xff] }
  0x95   :  { %530 = vmatpush.msra.mxu2 %v488_v8  ;;  %605 = vmatpush.msrb.mxu0 %v488_v8 }
  0x96   :  { %576 = vmatpush.msra.mxu3 %v472_v0  ;;  %503 = vmatpush.msra.mxu1 %v470_v16 }
  0x97   :  { %531 = vmatpush.msra.mxu2 %v487_v10  ;;  %606 = vmatpush.msrb.mxu0 %v487_v10 }
  0x98   :  { %577 = vmatpush.msra.mxu3 %v471_v14 }
  0x99   :  { %532 = vmatpush.msra.mxu2 %v486_v11  ;;  %607 = vmatpush.msrb.mxu0 %v486_v11 }
  0x9a   :  { %v152_v1 = vpop.f32.mrf.mxu1  ;;  %v74_v17 = vpop.f32.mrf.mxu0  ;;  %578 = vmatpush.msra.mxu3 %v470_v16 }
  0x9b   :  { %213 = vmatmul.f32.gmra.mxu2 %v152_v1  ;;  %242 = vmatmul.f32.gmra.mxu3 %v152_v1  ;;  %v483_v1 = vld [vmem:[%s1545_s4 + $0xa0] sm:$0xff] }
  0x9c   :  { %271 = vmatmul.f32.gmra.mxu0 %v74_v17  ;;  %300 = vmatmul.f32.gmra.mxu1 %v74_v17  ;;  %v469_v17 = vld [vmem:[%s1545_s4 + $0x30] sm:$0xff] }
  0x9d   :  { %533 = vmatpush.msra.mxu2 %v485_v13  ;;  %608 = vmatpush.msrb.mxu0 %v485_v13 }
  0x9e   :  { %504 = vmatpush.msra.mxu1 %v469_v17  ;;  %579 = vmatpush.msra.mxu3 %v469_v17 }
  0x9f   :  { %534 = vmatpush.msra.mxu2 %v484_v15  ;;  %609 = vmatpush.msrb.mxu0 %v484_v15 }
  0xa0   :  { %505 = vmatpush.msra.mxu1 %v468_v22  ;;  %580 = vmatpush.msra.mxu3 %v468_v22 }
  0xa1   :  { %535 = vmatpush.msra.mxu2 %v483_v1  ;;  %610 = vmatpush.msrb.mxu0 %v483_v1 }
  0xa2   :  { %506 = vmatpush.msra.mxu1 %v467_v25  ;;  %581 = vmatpush.msra.mxu3 %v467_v25 }
  0xa3   :  { %822 = vmatmul.msk.f32.vlgmr.msrb.gmra.mxu2 %vm35_vm0, %v818_v18  ;;  %v482_v18 = vld [vmem:[%s1545_s4 + $0x98] sm:$0xff] }
  0xa4   :  { %536 = vmatpush.msra.mxu2 %v482_v18  ;;  %611 = vmatpush.msrb.mxu0 %v482_v18 }
  0xa5   :  { %507 = vmatpush.msra.mxu1 %v466_v27  ;;  %582 = vmatpush.msra.mxu3 %v466_v27 }
  0xa6   :  { %537 = vmatpush.msra.mxu2 %v481_v23  ;;  %612 = vmatpush.msrb.mxu0 %v481_v23 }
  0xa7   :  { %508 = vmatpush.msra.mxu1 %v465_v30  ;;  %583 = vmatpush.msra.mxu3 %v465_v30 }
  0xa8   :  { %538 = vmatpush.msra.mxu2 %v480_v26  ;;  %613 = vmatpush.msrb.mxu0 %v480_v26 }
  0xa9   :  { %509 = vmatpush.msra.mxu1 %v464_v31  ;;  %584 = vmatpush.msra.mxu3 %v464_v31 }
  0xaa   :  { %539 = vmatpush.msra.mxu2 %v479_v28  ;;  %614 = vmatpush.msrb.mxu0 %v479_v28 }
  0xab   :  { %823 = vmatmul.msk.f32.gmra.mxu2 %vm35_vm0, %v819_v19  ;;  %510 = vmatpush.msra.mxu1 %v463_v32 }
  0xac   :  { %585 = vmatpush.msra.mxu3 %v463_v32  ;;  %v693_v32 = vld [vmem:[%s1547_s5 + $0xf8] sm:$0xff] }
  0xad   :  { %714 = vmatpush.msrb.mxu2 %v693_v32 }
  0xb3   :  { %824 = vmatmul.msk.f32.gmra.mxu2 %vm35_vm0, %v820_v20 }
  0xbb   :  { %825 = vmatmul.msk.f32.gmra.mxu2 %vm35_vm0, %v821_v21 }
 0x101   :  { %v263_v21 = vpop.f32.mrf.mxu0  ;;  %v292_v36 = vpop.f32.mrf.mxu1 }
 0x106   :  { %v1257_v54 = vpop.f32.mrf.mxu2  ;;  %v234_v24 = vpop.f32.mrf.mxu3 }
 0x107   :  { %v293_v40 = vadd.f32 %v292_v36, %v234_v24  ;;  %v264_v46 = vadd.f32 %v263_v21, %v1257_v54  ;;  %v691_v36 = vld [vmem:[%s1547_s5 + $0xe8] sm:$0xff] }
 0x108   :  { %715 = vmatpush.msrb.mxu2 %v691_v36 }
 0x109   :  { %v266_v29 = vpop.f32.mrf.mxu0  ;;  %v295_v42 = vpop.f32.mrf.mxu1 }
 0x10e   :  { %v1259_v55 = vpop.f32.mrf.mxu2  ;;  %v237_v33 = vpop.f32.mrf.mxu3 }
 0x10f   :  { %v296_v50 = vadd.f32 %v295_v42, %v237_v33  ;;  %v267_v54 = vadd.f32 %v266_v29, %v1259_v55  ;;  %v692_v33 = vld [vmem:[%s1547_s5 + $0xf0] sm:$0xff] }
 0x110   :  { %694 = vmatpush.msrb.mxu1 %v692_v33  ;;  %v665_v33 = vld [vmem:[%s1547_s5 + $0x18] sm:$0xff] }
 0x111   :  { %v269_v34 = vpop.f32.mrf.mxu0  ;;  %v298_v59 = vpop.f32.mrf.mxu1 }
 0x116   :  { %v1261_v56 = vpop.f32.mrf.mxu2  ;;  %v240_v35 = vpop.f32.mrf.mxu3 }
 0x117   :  { %v299_v2 = vadd.f32 %v298_v59, %v240_v35  ;;  %v270_v9 = vadd.f32 %v269_v34, %v1261_v56 }
 0x119   :  { %v272_v37 = vpop.f32.mrf.mxu0  ;;  %v301_v8 = vpop.f32.mrf.mxu1 }
 0x11e   :  { %v1263_v57 = vpop.f32.mrf.mxu2  ;;  %v243_v39 = vpop.f32.mrf.mxu3 }
 0x11f   :  { %v302_v0 = vadd.f32 %v301_v8, %v243_v39  ;;  %v273_v1 = vadd.f32 %v272_v37, %v1263_v57  ;;  %v690_v37 = vld [vmem:[%s1547_s5 + $0xe0] sm:$0xff] }
 0x120   :  { %695 = vmatpush.msrb.mxu1 %v690_v37  ;;  %v678_v8 = vld [vmem:[%s1547_s5 + $0x80] sm:$0xff]  ;;  %v663_v37 = vld [vmem:[%s1547_s5 + $0x8] sm:$0xff] }
 0x126   :  { %v338_v4 = vpop.f32.mrf.mxu2 }
 0x127   :  { %399 = vmatmul.f32.vlgmr.msrb.gmra.mxu3 %v338_v4  ;;  %428 = vmatmul.f32.vlgmr.msra.gmra.mxu0 %v338_v4 }
 0x12e   :  { %v341_v12 = vpop.f32.mrf.mxu2 }
 0x12f   :  { %402 = vmatmul.f32.gmra.mxu3 %v341_v12  ;;  %431 = vmatmul.f32.gmra.mxu0 %v341_v12 }
 0x136   :  { %v344_v19 = vpop.f32.mrf.mxu2 }
 0x137   :  { %405 = vmatmul.f32.gmra.mxu3 %v344_v19  ;;  %434 = vmatmul.f32.gmra.mxu0 %v344_v19 }
 0x13e   :  { %v347_v20 = vpop.f32.mrf.mxu2 }
 0x13f   :  { %408 = vmatmul.f32.gmra.mxu3 %v347_v20  ;;  %437 = vmatmul.f32.gmra.mxu0 %v347_v20 }
 0x1a4   :  { %v429_v43 = vpop.f32.mrf.mxu0 }
 0x1a5   :  { %v442_v44 = vadd.f32 %v429_v43, %v293_v40  ;;  %v689_v40 = vld [vmem:[%s1547_s5 + $0xd8] sm:$0xff] }
 0x1a6   :  { %716 = vmatpush.msrb.mxu2 %v689_v40 }
 0x1a7   :  { %v1364_v45 = vadd.f32 %v452_v41, %v442_v44 }
 0x1a9   :  { %v563_v47 = vmul.f32 %v1364_v45, %v1364_v45  ;;  %540 = vmatmul.f32.vlgmr.msra.gmra.mxu2 %v1364_v45 }
 0x1aa   :  { %v400_v49 = vpop.f32.mrf.mxu3 }
 0x1ab   :  { %v441_v51 = vadd.f32 %v400_v49, %v264_v46  ;;  %615 = vmatmul.f32.vlgmr.msrb.gmra.mxu0 %v563_v47  ;;  %v686_v49 = vld [vmem:[%s1547_s5 + $0xc0] sm:$0xff] }
 0x1ac   :  { %v432_v52 = vpop.f32.mrf.mxu0 }
 0x1ad   :  { %v1370_v53 = vadd.f32 %v451_v48, %v441_v51  ;;  %v444_v58 = vadd.f32 %v432_v52, %v296_v50  ;;  %v685_v51 = vld [vmem:[%s1547_s5 + $0xb8] sm:$0xff]  ;;  %v684_v52 = vld [vmem:[%s1547_s5 + $0xb0] sm:$0xff] }
 0x1af   :  { %v562_v60 = vmul.f32 %v1370_v53, %v1370_v53  ;;  %v1374_v61 = vadd.f32 %v452_v41, %v444_v58  ;;  %511 = vmatmul.f32.vlgmr.msra.gmra.mxu1 %v1370_v53 }
 0x1b1   :  { %543 = vmatmul.f32.gmra.mxu2 %v1374_v61  ;;  %586 = vmatmul.f32.vlgmr.msra.gmra.mxu3 %v562_v60  ;;  %v565_v62 = vmul.f32 %v1374_v61, %v1374_v61  ;;  %v683_v60 = vld [vmem:[%s1547_s5 + $0xa8] sm:$0xff] }
 0x1b2   :  { %v403_v63 = vpop.f32.mrf.mxu3 }
 0x1b3   :  { %v443_v3 = vadd.f32 %v403_v63, %v267_v54  ;;  %618 = vmatmul.f32.gmra.mxu0 %v565_v62  ;;  %v682_v54 = vld [vmem:[%s1547_s5 + $0xa0] sm:$0xff] }
 0x1b4   :  { %v435_v4 = vpop.f32.mrf.mxu0 }
 0x1b5   :  { %v1381_v5 = vadd.f32 %v451_v48, %v443_v3  ;;  %v446_v6 = vadd.f32 %v435_v4, %v299_v2  ;;  %v681_v3 = vld [vmem:[%s1547_s5 + $0x98] sm:$0xff]  ;;  %v680_v4 = vld [vmem:[%s1547_s5 + $0x90] sm:$0xff] }
 0x1b7   :  { %v1383_v7 = vadd.f32 %v452_v41, %v446_v6  ;;  %514 = vmatmul.f32.gmra.mxu1 %v1381_v5  ;;  %v564_v55 = vmul.f32 %v1381_v5, %v1381_v5  ;;  %v679_v6 = vld [vmem:[%s1547_s5 + $0x88] sm:$0xff] }
 0x1b9   :  { %546 = vmatmul.f32.gmra.mxu2 %v1383_v7  ;;  %589 = vmatmul.f32.gmra.mxu3 %v564_v55  ;;  %v567_v10 = vmul.f32 %v1383_v7, %v1383_v7 }
 0x1ba   :  { %v406_v11 = vpop.f32.mrf.mxu3 }
 0x1bb   :  { %v445_v12 = vadd.f32 %v406_v11, %v270_v9  ;;  %621 = vmatmul.f32.gmra.mxu0 %v567_v10 }
 0x1bc   :  { %v438_v13 = vpop.f32.mrf.mxu0 }
 0x1bd   :  { %v1392_v14 = vadd.f32 %v451_v48, %v445_v12  ;;  %v448_v15 = vadd.f32 %v438_v13, %v302_v0  ;;  %v677_v0 = vld [vmem:[%s1547_s5 + $0x78] sm:$0xff]  ;;  %v676_v12 = vld [vmem:[%s1547_s5 + $0x70] sm:$0xff] }
 0x1bf   :  { %v1394_v16 = vadd.f32 %v452_v41, %v448_v15  ;;  %517 = vmatmul.f32.gmra.mxu1 %v1392_v14  ;;  %v566_v56 = vmul.f32 %v1392_v14, %v1392_v14  ;;  %v688_v41 = vld [vmem:[%s1547_s5 + $0xd0] sm:$0xff] }
 0x1c0   :  { %696 = vmatpush.msrb.mxu1 %v688_v41 }
 0x1c1   :  { %549 = vmatmul.f32.gmra.mxu2 %v1394_v16  ;;  %592 = vmatmul.f32.gmra.mxu3 %v566_v56  ;;  %v569_v17 = vmul.f32 %v1394_v16, %v1394_v16 }
 0x1c2   :  { %v409_v18 = vpop.f32.mrf.mxu3  ;;  %697 = vmatpush.msrb.mxu1 %v686_v49 }
 0x1c3   :  { %v447_v19 = vadd.f32 %v409_v18, %v273_v1  ;;  %624 = vmatmul.f32.gmra.mxu0 %v569_v17  ;;  %v675_v1 = vld [vmem:[%s1547_s5 + $0x68] sm:$0xff]  ;;  %v674_v17 = vld [vmem:[%s1547_s5 + $0x60] sm:$0xff] }
 0x1c4   :  { %698 = vmatpush.msrb.mxu1 %v684_v52 }
 0x1c5   :  { %v1403_v20 = vadd.f32 %v451_v48, %v447_v19  ;;  %v687_v48 = vld [vmem:[%s1547_s5 + $0xc8] sm:$0xff]  ;;  %v673_v19 = vld [vmem:[%s1547_s5 + $0x58] sm:$0xff] }
 0x1c6   :  { %717 = vmatpush.msrb.mxu2 %v687_v48  ;;  %699 = vmatpush.msrb.mxu1 %v682_v54 }
 0x1c7   :  { %520 = vmatmul.f32.gmra.mxu1 %v1403_v20  ;;  %v568_v21 = vmul.f32 %v1403_v20, %v1403_v20 }
 0x1c8   :  { %718 = vmatpush.msrb.mxu2 %v685_v51  ;;  %700 = vmatpush.msrb.mxu1 %v680_v4 }
 0x1c9   :  { %595 = vmatmul.f32.gmra.mxu3 %v568_v21  ;;  %v672_v21 = vld [vmem:[%s1547_s5 + $0x50] sm:$0xff] }
 0x1ca   :  { %719 = vmatpush.msrb.mxu2 %v683_v60  ;;  %701 = vmatpush.msrb.mxu1 %v678_v8 }
 0x1cc   :  { %720 = vmatpush.msrb.mxu2 %v681_v3  ;;  %702 = vmatpush.msrb.mxu1 %v676_v12 }
 0x1ce   :  { %721 = vmatpush.msrb.mxu2 %v679_v6  ;;  %703 = vmatpush.msrb.mxu1 %v674_v17 }
 0x1d0   :  { %722 = vmatpush.msrb.mxu2 %v677_v0  ;;  %704 = vmatpush.msrb.mxu1 %v672_v21 }
 0x1d2   :  { %723 = vmatpush.msrb.mxu2 %v675_v1 }
 0x1d4   :  { %724 = vmatpush.msrb.mxu2 %v673_v19 }
 0x228   :  { %v616_v57 = vpop.f32.mrf.mxu0 }
 0x22c   :  { %v512_v22 = vpop.f32.mrf.mxu1  ;;  %v541_v23 = vpop.f32.mrf.mxu2 }
 0x22d   :  { %v542_v34 = vadd.f32 %v541_v23, %v512_v22 }
 0x230   :  { %v619_v27 = vpop.f32.mrf.mxu0 }
 0x234   :  { %v515_v24 = vpop.f32.mrf.mxu1  ;;  %v544_v25 = vpop.f32.mrf.mxu2 }
 0x235   :  { %v587_v26 = vpop.f32.mrf.mxu3  ;;  %v545_v31 = vadd.f32 %v544_v25, %v515_v24  ;;  %v670_v24 = vld [vmem:[%s1547_s5 + $0x40] sm:$0xff] }
 0x236   :  { %v617_v62 = vadd.f32 %v616_v57, %v587_v26  ;;  %v671_v57 = vld [vmem:[%s1547_s5 + $0x48] sm:$0xff]  ;;  %v669_v26 = vld [vmem:[%s1547_s5 + $0x38] sm:$0xff]  ;;  %705 = vmatpush.msrb.mxu1 %v670_v24 }
 0x237   :  { %v553_v38 = vadd.f32 %v545_v31, %v542_v34  ;;  %725 = vmatpush.msrb.mxu2 %v671_v57  ;;  %v666_v31 = vld [vmem:[%s1547_s5 + $0x20] sm:$0xff]  ;;  %v664_v34 = vld [vmem:[%s1547_s5 + $0x10] sm:$0xff] }
 0x238   :  { %v622_v39 = vpop.f32.mrf.mxu0 }
 0x239   :  { %726 = vmatpush.msrb.mxu2 %v669_v26 }
 0x23c   :  { %v518_v28 = vpop.f32.mrf.mxu1  ;;  %v547_v29 = vpop.f32.mrf.mxu2 }
 0x23d   :  { %v590_v30 = vpop.f32.mrf.mxu3  ;;  %v548_v35 = vadd.f32 %v547_v29, %v518_v28 }
 0x23e   :  { %v620_v58 = vadd.f32 %v619_v27, %v590_v30  ;;  %v668_v27 = vld [vmem:[%s1547_s5 + $0x30] sm:$0xff]  ;;  %v667_v30 = vld [vmem:[%s1547_s5 + $0x28] sm:$0xff] }
 0x23f   :  { %v554_v44 = vadd.f32 %v553_v38, %v548_v35  ;;  %706 = vmatpush.msrb.mxu1 %v668_v27  ;;  %727 = vmatpush.msrb.mxu2 %v667_v30  ;;  %v662_v38 = vld [vmem:[%s1547_s5] sm:$0xff] }
 0x240   :  { %v628_v55 = vadd.f32 %v620_v58, %v617_v62  ;;  %v625_v9 = vpop.f32.mrf.mxu0 }
 0x241   :  { %707 = vmatpush.msrb.mxu1 %v666_v31  ;;  %728 = vmatpush.msrb.mxu2 %v665_v33 }
 0x243   :  { %708 = vmatpush.msrb.mxu1 %v664_v34  ;;  %729 = vmatpush.msrb.mxu2 %v663_v37 }
 0x244   :  { %v521_v42 = vpop.f32.mrf.mxu1  ;;  %v550_v43 = vpop.f32.mrf.mxu2 }
 0x245   :  { %v551_v46 = vadd.f32 %v550_v43, %v521_v42  ;;  %v593_v47 = vpop.f32.mrf.mxu3  ;;  %709 = vmatpush.msrb.mxu1 %v662_v38 }
 0x246   :  { %v623_v63 = vadd.f32 %v622_v39, %v593_v47 }
 0x247   :  { %v555_v50 = vadd.f32 %v554_v44, %v551_v46 }
 0x248   :  { %v629_v13 = vadd.f32 %v628_v55, %v623_v63 }
 0x249   :  { %v556_v59 = vrot.slane %v555_v50, 4 }
 0x24b   :  { %v557_v2 = vadd.f32 %v556_v59, %v555_v50  ;;  %v641_v50 = vld [vmem:[%s1548_s6] sm:$0x1] }
 0x24c   :  { %v654_v59 = vld [vmem:[%s1549_s7] sm:$0x1] }
 0x24d   :  { %v558_v10 = vrot.slane %v557_v2, 2  ;;  %v596_v11 = vpop.f32.mrf.mxu3 }
 0x24e   :  { %v626_v15 = vadd.f32 %v625_v9, %v596_v11 }
 0x24f   :  { %v559_v56 = vadd.f32 %v558_v10, %v557_v2 }
 0x250   :  { %v630_v18 = vadd.f32 %v629_v13, %v626_v15 }
 0x251   :  { %v560_v22 = vrot.slane %v559_v56, 1 }
 0x252   :  { %v631_v23 = vrot.slane %v630_v18, 4 }
 0x253   :  { %v561_v28 = vadd.f32 %v560_v22, %v559_v56 }
 0x254   :  { %v632_v25 = vadd.f32 %v631_v23, %v630_v18 }
 0x255   :  { %v637_v35 = vmul.f32 0.00048828125, %v561_v28 }
 0x256   :  { %v633_v29 = vrot.slane %v632_v25, 2 }
 0x257   :  { %v639_v40 = vmul.f32 %v637_v35, %v637_v35 }
 0x258   :  { %v634_v32 = vadd.f32 %v633_v29, %v632_v25 }
 0x25a   :  { %v635_v36 = vrot.slane %v634_v32, 1 }
 0x25c   :  { %v636_v39 = vadd.f32 %v635_v36, %v634_v32 }
 0x25e   :  { %v638_v41 = vmul.f32 0.00048828125, %v636_v39 }
 0x260   :  { %v640_v42 = vsub.f32 %v638_v41, %v639_v40 }
 0x262   :  { %v642_v43 = vadd.f32 1e-05, %v640_v42 }
 0x264   :  { %858 = vrsqrt.f32 %v642_v43  ;;  %vm649_vm2 = vweird.f32 %v642_v43 }
 0x26a   :  { %v859_v44 = vpop.eup %858 }
 0x26b   :  { %v644_v46 = vmul.f32 %v859_v44, %v642_v43  ;;  %vm650_vm1 = vweird.f32 %v859_v44 }
 0x26c   :  { %vm651_vm3 = vmor %vm649_vm2, %vm650_vm1 }
 0x26d   :  { %v645_v47 = vmul.f32 %v859_v44, %v644_v46 }
 0x26f   :  { %v646_v48 = vmul.f32 0.5, %v645_v47 }
 0x271   :  { %v647_v49 = vsub.f32 1.5, %v646_v48 }
 0x273   :  { %v648_v51 = vmul.f32 %v859_v44, %v647_v49 }
 0x275   :  { %v652_v52 = vsel %vm651_vm3, %v859_v44, %v648_v51 }
 0x276   :  { %v653_v58 = vmul.f32 %v652_v52, %v641_v50 }
 0x278   :  { %v655_v60 = vmul.f32 %v653_v58, %v637_v35 }
 0x27a   :  { %v656_v54 = vsub.f32 %v654_v59, %v655_v60 }
 0x27c   :  { %v658_v62 = vperm.slane %v656_v54, 0 }
 0x27e   :  { %v661_v63 = vsel %vm660_vm4, %v653_v58, %v658_v62 }
 0x27f   :  { %710 = vmatmul.f32.vlgmr.msrb.gmra.mxu1 %v661_v63  ;;  %730 = vmatmul.f32.vlgmr.msrb.gmra.mxu2 %v661_v63 }
 0x2fc   :  { %v711_v2 = vpop.f32.mrf.mxu1 }
 0x2fd   :  { %v734_v3 = vperm.slane %v711_v2, 0  ;;  %v744_v4 = vperm.slane %v711_v2, 1 }
 0x2ff   :  { %v736_v6 = vmul.f32 %v734_v3, %v1370_v53  ;;  %v738_v55 = vmul.f32 %v734_v3, %v1381_v5  ;;  %v740_v8 = vmul.f32 %v734_v3, %v1392_v14  ;;  %v742_v9 = vmul.f32 %v734_v3, %v1403_v20 }
 0x301   :  { %v746_v10 = vadd.f32 %v744_v4, %v736_v6  ;;  %v748_v11 = vadd.f32 %v744_v4, %v738_v55  ;;  %v750_v0 = vadd.f32 %v744_v4, %v740_v8  ;;  %v752_v12 = vadd.f32 %v744_v4, %v742_v9 }
 0x302   :  { %v731_v13 = vpop.f32.mrf.mxu2 }
 0x303   :  { %v754_v15 = vmax.f32 %v746_v10, 0.0  ;;  %v756_v56 = vmax.f32 %v748_v11, 0.0  ;;  %v758_v1 = vmax.f32 %v750_v0, 0.0  ;;  %v760_v17 = vmax.f32 %v752_v12, 0.0 }
 0x304   :  { %v735_v18 = vperm.slane %v731_v13, 0  ;;  %v745_v53 = vperm.slane %v731_v13, 1 }
 0x305   :  { %762 = vst [vmem:[%s1550_s8] sm:$0xff] %v754_v15 }
 0x306   :  { %764 = vst [vmem:[%s1550_s8 + $0x10] sm:$0xff] %v756_v56  ;;  %v737_v5 = vmul.f32 %v735_v18, %v1364_v45  ;;  %v739_v14 = vmul.f32 %v735_v18, %v1374_v61  ;;  %v741_v20 = vmul.f32 %v735_v18, %v1383_v7  ;;  %v743_v19 = vmul.f32 %v735_v18, %v1394_v16 }
 0x307   :  { %766 = vst [vmem:[%s1550_s8 + $0x20] sm:$0xff] %v758_v1 }
 0x308   :  { %768 = vst [vmem:[%s1550_s8 + $0x30] sm:$0xff] %v760_v17  ;;  %v747_v21 = vadd.f32 %v745_v53, %v737_v5  ;;  %v749_v22 = vadd.f32 %v745_v53, %v739_v14  ;;  %v751_v23 = vadd.f32 %v745_v53, %v741_v20  ;;  %v753_v57 = vadd.f32 %v745_v53, %v743_v19 }
 0x30a   :  { %v755_v24 = vmax.f32 %v747_v21, 0.0  ;;  %v757_v45 = vmax.f32 %v749_v22, 0.0  ;;  %v759_v25 = vmax.f32 %v751_v23, 0.0  ;;  %v761_v61 = vmax.f32 %v753_v57, 0.0 }
 0x30c   :  { %763 = vst [vmem:[%s1550_s8 + $0x8] sm:$0xff] %v755_v24 }
 0x30d   :  { %765 = vst [vmem:[%s1550_s8 + $0x18] sm:$0xff] %v757_v45 }
 0x30e   :  { %767 = vst [vmem:[%s1550_s8 + $0x28] sm:$0xff] %v759_v25 }
 0x30f   :  { %769 = vst [vmem:[%s1550_s8 + $0x38] sm:$0xff] %v761_v61 }

</bundles_post_ra>
